<compile_context>
chip_gen: v6e
topology: v6e:2x2x1
jax: 0.10.0
libtpu: 0.0.40
codegen_flags: <defaults>
</compile_context>

<pallas_src>
import jax
import jax.numpy as jnp
from jax.experimental import pallas as pl
from jax.experimental.pallas import tpu as pltpu


def _head_kernel(x_ref, w1_ref, b1_ref, w2_ref, b2_ref, o_ref):
    # x:  (TB, D) f32   w1: (D, H) bf16/f32   b1: (1, H) f32
    # w2: (1, H)  f32   b2: (1, 1) f32 in SMEM   o: (1, TB) f32
    x = x_ref[...].astype(w1_ref.dtype)          # bf16 feed for the MXU (f32 passthrough if w1 is f32)
    # Linear(D, H) — MXU, f32 accumulation.
    h = jnp.dot(x, w1_ref[...], preferred_element_type=jnp.float32)
    # Dropout(p=0.2) -> identity in eval-mode forward.
    # TODO(synk): training-mode dropout (pltpu.prng_random_bits mask) not implemented.
    h = jnp.maximum(h + b1_ref[...], 0.0)        # bias + ReLU kept in f32 (v5e-safe)
    # Dropout(p=0.2) -> identity in eval-mode forward.
    # Linear(H, 1): contract w2 (1, H) against h's last axis -> lane-dense (1, TB).
    y = jax.lax.dot_general(
        w2_ref[...], h,
        dimension_numbers=(((1,), (1,)), ((), ())),
        preferred_element_type=jnp.float32,
    )
    # Sigmoid (EUP) with the scalar bias read from SMEM.
    o_ref[...] = jax.nn.sigmoid(y + b2_ref[0, 0]).astype(o_ref.dtype)


def _pick_block_b(D, H, w1_bytes, vmem_budget, max_block_b=512):
    """Largest batch tile (multiple of 128) whose working set fits the VMEM budget."""
    resident = 2 * D * H * w1_bytes + 4 * H * 4          # w1 + b1 + w2 row (x2 buffers, conservative)
    per_row = 2 * D * 4 + H * 4 + 2 * 4                  # 2x x-tile bufs + f32 h + out
    avail = max(vmem_budget - resident, 2 << 20)
    tb = (avail // per_row // 128) * 128
    return int(max(128, min(max_block_b, tb)))


def explanatory_task_head(features, w1, b1, w2, b2, *, block_b=None,
                          vmem_budget=24 << 20):
    """Fused forward pass of ExplanatoryTaskHead (eval mode).

    features: (B, D) float32
    w1: (D, H)   -- PyTorch Linear(D, H).weight transposed; f32 or bf16
    b1: (H,)     -- f32
    w2: (1, H)   -- PyTorch Linear(H, 1).weight as-is, i.e. (out, in)
    b2: (1,)     -- f32
    Returns (B,) float32, matching `self.clf(features).reshape(-1)`.

    `vmem_budget`: shrink (e.g. 16 MiB) on v7x (64 MiB physical VMEM per core).
    """
    B, D = features.shape
    H = w1.shape[1]
    w1_bytes = jnp.dtype(w1.dtype).itemsize

    TB = block_b if block_b is not None else _pick_block_b(D, H, w1_bytes, vmem_budget)
    assert TB % 128 == 0, "block_b must be a multiple of 128 (lane-aligned output blocks)"

    num_tiles = int(pl.cdiv(B, TB))
    B_pad = num_tiles * TB
    if B_pad != B:
        features = jnp.pad(features, ((0, B_pad - B), (0, 0)))

    # VMEM working set: resident weights (x2 buffers) + double-buffered x tiles + f32 h.
    need = (2 * D * H * w1_bytes + 4 * H * 4
            + 2 * TB * D * 4
            + TB * H * 4
            + 2 * TB * 4)
    vmem_limit = int(min(max(2 * need + (8 << 20), 32 << 20), 64 << 20))

    cost = pl.CostEstimate(
        flops=2 * B_pad * D * H + 2 * B_pad * H,
        transcendentals=B_pad,                       # one sigmoid per row
        bytes_accessed=(B_pad * D * 4 + D * H * w1_bytes + 2 * H * 4 + 4 + B_pad * 4),
    )

    out = pl.pallas_call(
        _head_kernel,
        out_shape=jax.ShapeDtypeStruct((1, B_pad), jnp.float32),
        grid=(num_tiles,),
        in_specs=[
            pl.BlockSpec((TB, D), lambda i: (i, 0)),                 # x tile (pipelined)
            pl.BlockSpec((D, H), lambda i: (0, 0)),                  # w1 (VMEM-resident)
            pl.BlockSpec((1, H), lambda i: (0, 0)),                  # b1 (VMEM-resident)
            pl.BlockSpec((1, H), lambda i: (0, 0)),                  # w2 row (VMEM-resident)
            pl.BlockSpec(memory_space=pltpu.MemorySpace.SMEM),       # b2 scalar in SMEM
        ],
        out_specs=pl.BlockSpec((1, TB), lambda i: (0, i)),           # lane-dense output slab
        compiler_params=pltpu.CompilerParams(
            dimension_semantics=("parallel",),       # shard batch tiles across TCs on v7x
            vmem_limit_bytes=vmem_limit,
        ),
        cost_estimate=cost,
    )(features, w1, b1.reshape(1, H), w2, b2.reshape(1, 1))

    return out.reshape(-1)[:B]


def init_params(key, input_dim, hidden=1024, w1_dtype=jnp.bfloat16):
    """PyTorch nn.Linear-style init (uniform +/- 1/sqrt(fan_in)).
    w1 is returned transposed to (in, out); w2 keeps PyTorch's (out, in) = (1, H) layout."""
    k1, k2, k3, k4 = jax.random.split(key, 4)
    bound1 = 1.0 / (input_dim ** 0.5)
    bound2 = 1.0 / (hidden ** 0.5)
    w1 = jax.random.uniform(k1, (input_dim, hidden), jnp.float32, -bound1, bound1).astype(w1_dtype)
    b1 = jax.random.uniform(k2, (hidden,), jnp.float32, -bound1, bound1)
    w2 = jax.random.uniform(k3, (1, hidden), jnp.float32, -bound2, bound2)
    b2 = jax.random.uniform(k4, (1,), jnp.float32, -bound2, bound2)
    return w1, b1, w2, b2


if __name__ == "__main__":
    # Scaled-down shapes (module default: input_dim=1536, hidden=1024).
    # B chosen so the batch grid has 3 tiles at TB=128 including a padded final tile.
    B, D, H = 300, 256, 512
    TB = 128

    key = jax.random.PRNGKey(0)
    k_x, k_p = jax.random.split(key)
    features = jax.random.normal(k_x, (B, D), jnp.float32)
    w1, b1, w2, b2 = init_params(k_p, D, H, w1_dtype=jnp.bfloat16)

    out = explanatory_task_head(features, w1, b1, w2, b2, block_b=TB)
    out = jax.block_until_ready(out)

    # Pure-JAX reference in f32, using the same bf16-rounded MXU inputs as the kernel.
    x32 = features.astype(jnp.bfloat16).astype(jnp.float32)
    w1f = w1.astype(jnp.float32)
    h_ref = jnp.maximum(
        jnp.dot(x32, w1f, precision=jax.lax.Precision.HIGHEST) + b1, 0.0)
    ref = jax.nn.sigmoid(
        jnp.dot(h_ref, w2.T, precision=jax.lax.Precision.HIGHEST) + b2).reshape(-1)

    assert out.shape == (B,), out.shape
    assert bool(jnp.all(jnp.isfinite(out)))
    err = float(jnp.max(jnp.abs(out - ref)))
    assert err < 1e-4, f"max abs err {err}"

    print("KERNEL_OK")
</pallas_src>

<mosaic_0001>
module attributes {stable_mosaic.version = 11 : i64} {
  func.func @_head_kernel(%arg0: i32, %arg1: memref<128x256xf32, #tpu.memory_space<vmem>>, %arg2: memref<256x512xbf16, #tpu.memory_space<vmem>>, %arg3: memref<1x512xf32, #tpu.memory_space<vmem>>, %arg4: memref<1x512xf32, #tpu.memory_space<vmem>>, %arg5: memref<1x1xf32, #tpu.memory_space<smem>>, %arg6: memref<1x128xf32, #tpu.memory_space<vmem>>) attributes {dimension_semantics = [#tpu.dimension_semantics<parallel>], iteration_bounds = array<i64: 3>, scalar_prefetch = 0 : i64, scratch_operands = 0 : i64, tpu.core_type = #tpu.core_type<tc>, window_params = [{transform_indices = @transform_0, window_bounds = array<i64: 128, 256>}, {pipeline_mode = #tpu.pipeline_mode<synchronous>, transform_indices = @transform_1, window_bounds = array<i64: 256, 512>}, {pipeline_mode = #tpu.pipeline_mode<synchronous>, transform_indices = @transform_2, window_bounds = array<i64: 1, 512>}, {pipeline_mode = #tpu.pipeline_mode<synchronous>, transform_indices = @transform_3, window_bounds = array<i64: 1, 512>}, {transform_indices = @transform_4, window_bounds = array<i64: 1, 1>}, {transform_indices = @transform_5, window_bounds = array<i64: 1, 128>}]} {
    %c0 = arith.constant 0 : index
    %c0_0 = arith.constant 0 : index
    %0 = vector.load %arg1[%c0, %c0_0] : memref<128x256xf32, #tpu.memory_space<vmem>>, vector<128x256xf32>
    %1 = arith.truncf %0 : vector<128x256xf32> to vector<128x256xbf16>
    %c0_1 = arith.constant 0 : index
    %c0_2 = arith.constant 0 : index
    %2 = vector.load %arg2[%c0_1, %c0_2] : memref<256x512xbf16, #tpu.memory_space<vmem>>, vector<256x512xbf16>
    %cst = arith.constant dense<0.000000e+00> : vector<128x512xf32>
    %3 = tpu.matmul %1, %2, %cst {dimension_numbers = #tpu.dot_dimension_numbers<[1], [0], [0], [1], [0, 0, 1, 1], [], []>} : vector<128x256xbf16>, vector<256x512xbf16>, vector<128x512xf32> -> vector<128x512xf32>
    %c0_3 = arith.constant 0 : index
    %c0_4 = arith.constant 0 : index
    %4 = vector.load %arg3[%c0_3, %c0_4] : memref<1x512xf32, #tpu.memory_space<vmem>>, vector<1x512xf32>
    %5 = vector.broadcast %4 : vector<1x512xf32> to vector<128x512xf32>
    %6 = arith.addf %3, %5 : vector<128x512xf32>
    %cst_5 = arith.constant 0.000000e+00 : f32
    %7 = vector.broadcast %cst_5 : f32 to vector<128x512xf32>
    %8 = arith.maximumf %6, %7 : vector<128x512xf32>
    %c0_6 = arith.constant 0 : index
    %c0_7 = arith.constant 0 : index
    %9 = vector.load %arg4[%c0_6, %c0_7] : memref<1x512xf32, #tpu.memory_space<vmem>>, vector<1x512xf32>
    %cst_8 = arith.constant dense<0.000000e+00> : vector<1x128xf32>
    %10 = tpu.matmul %9, %8, %cst_8 {dimension_numbers = #tpu.dot_dimension_numbers<[1], [1], [0], [0], [0, 0, 1, 0], [], []>} : vector<1x512xf32>, vector<128x512xf32>, vector<1x128xf32> -> vector<1x128xf32>
    %c0_9 = arith.constant 0 : index
    %c0_10 = arith.constant 0 : index
    %11 = memref.load %arg5[%c0_9, %c0_10] : memref<1x1xf32, #tpu.memory_space<smem>>
    %12 = vector.broadcast %11 : f32 to vector<1x128xf32>
    %13 = arith.addf %10, %12 : vector<1x128xf32>
    %14 = arith.negf %13 : vector<1x128xf32>
    %15 = math.exp %14 : vector<1x128xf32>
    %cst_11 = arith.constant 1.000000e+00 : f32
    %16 = vector.broadcast %cst_11 : f32 to vector<1x128xf32>
    %17 = arith.addf %16, %15 : vector<1x128xf32>
    %18 = arith.divf %16, %17 : vector<1x128xf32>
    %c0_12 = arith.constant 0 : index
    %c0_13 = arith.constant 0 : index
    %19 = vector.load %arg6[%c0_12, %c0_13] : memref<1x128xf32, #tpu.memory_space<vmem>>, vector<1x128xf32>
    tpu.vector_store %arg6[%c0_12, %c0_13], %18 {strides = array<i32>} : memref<1x128xf32, #tpu.memory_space<vmem>>, vector<1x128xf32>,
    return
  }
  func.func @transform_0(%arg0: i32) -> (i32, i32) {
    %c0_i32 = arith.constant 0 : i32
    %c0_i32_0 = arith.constant 0 : i32
    return %arg0, %c0_i32 : i32, i32
  }
  func.func @transform_1(%arg0: i32) -> (i32, i32) {
    %c0_i32 = arith.constant 0 : i32
    %c0_i32_0 = arith.constant 0 : i32
    %c0_i32_1 = arith.constant 0 : i32
    return %c0_i32, %c0_i32_0 : i32, i32
  }
  func.func @transform_2(%arg0: i32) -> (i32, i32) {
    %c0_i32 = arith.constant 0 : i32
    %c0_i32_0 = arith.constant 0 : i32
    %c0_i32_1 = arith.constant 0 : i32
    return %c0_i32, %c0_i32_0 : i32, i32
  }
  func.func @transform_3(%arg0: i32) -> (i32, i32) {
    %c0_i32 = arith.constant 0 : i32
    %c0_i32_0 = arith.constant 0 : i32
    %c0_i32_1 = arith.constant 0 : i32
    return %c0_i32, %c0_i32_0 : i32, i32
  }
  func.func @transform_4(%arg0: i32) -> (i32, i32) {
    %c0_i32 = arith.constant 0 : i32
    %c0_i32_0 = arith.constant 0 : i32
    %c0_i32_1 = arith.constant 0 : i32
    return %c0_i32, %c0_i32_0 : i32, i32
  }
  func.func @transform_5(%arg0: i32) -> (i32, i32) {
    %c0_i32 = arith.constant 0 : i32
    %c0_i32_0 = arith.constant 0 : i32
    return %c0_i32, %arg0 : i32, i32
  }
}

</mosaic_0001>

<bundles_post_ra>
// kernel: tpu_custom_call.1
= control target key start
LH: loop header
LB: loop body
LE: loop exit
PB: predicated region body
PF: predicated region fallthrough
CT: control target
= control target key end

     0   :  { %s2192_s0 = inlined_call_operand.hbm [shape: f32[384,256], index: 0, kind: input, shape index: {}]   ;;  %s2193_s1 = inlined_call_operand.hbm [shape: bf16[256,512], index: 1, kind: input, shape index: {}]   ;;  %s2194_s2 = inlined_call_operand.vmem [shape: f32[1,512], index: 2, kind: input, shape index: {}]   ;;  %s2195_s3 = inlined_call_operand.hbm [shape: f32[1,512], index: 3, kind: input, shape index: {}]   ;;  %s2196_s4 = inlined_call_operand.<no memory space> [shape: f32[1,1], index: 4, kind: input, shape index: {}]   ;;  %s2197_s5 = inlined_call_operand.hbm [shape: f32[1,384], index: 5, kind: output, shape index: {}]  }
   0x1   :  { %10 = sst [smem:[#allocation2]] %s2196_s4 }
   0x2   :  { %11 = vsyncpa [#allocation4], 0 }
   0x3   :  { %13 = vsyncpa [#allocation4 + $0x1], 0 }
   0x4   :  { %14 = vsyncpa [#allocation7], 0 }
   0x5   :  { %15 = vsyncpa [#allocation5], 0 }
   0x6   :  { %17 = vsyncpa [#allocation5 + $0x1], 0  ;;  %s1726_s20 = smov 0   ;;  %s1728_s21 = smov 0  }
   0x7   :  { %s1730_s22 = smov 0   ;;  %s1732_s23 = smov 0  }
   0x8 LB: > { %s1747_s4 = sadd.s32 4294967295, %s1685_s23   ;;  %s1285_s24 = sadd.s32 4294967294, %s1685_s23   ;;  %s1685_s23 = sphi %s1732_s23, %s2267_s23   ;;  %s1681_s22 = sphi %s1730_s22, %s2266_s22   ;;  %s1677_s21 = sphi %s1728_s21, %s2265_s21   ;;  %s1673_s20 = sphi %s1726_s20, %s2264_s20  }
   0x9   : > { %p43_p0 = scmp.ne.s32.totalorder %s1677_s21, %s1673_s20  ;;  %p2198_p1 = scmp.eq.s32.totalorder %s1747_s4, 0 }
   0xa   : > { %p151_p2 = scmp.eq.s32.totalorder %s1747_s4, 2  ;;  %p157_p3 = scmp.eq.s32.totalorder %s1285_s24, 2 }
   0xb   : > { %p1756_p4 = por %p2198_p1, %p43_p0  ;;  %p1286_p5 = scmp.ge.s32.totalorder %s1685_s23, 1 }
   0xc   : > { %p1761_p6 = por %p157_p3, %p43_p0  ;;  %p164_p7 = scmp.lt.s32.totalorder %s1685_s23, 4 }
   0xd   : > { %s2210_s25 = scalar_select %p1756_p4, 1, 0 }
   0xe   : > { %s2211_s26 = scalar_select %p1761_p6, 1, 0 }
   0xf   : > { %p1766_p8 = pnand %p1286_p5, %p164_p7  ;;  %s1687_s28 = smov [#allocation6]  }
  0x10   : > { %s176_s29 = sshll.u32 %s1687_s28, 4  ;;  %s1688_s6 = smov [#allocation8]   ;;  %s177_s29 = int_to_ptr.vmem [resolvable:$true] %s176_s29 }
  0x11   : > { %s2212_s27 = scalar_select %p1766_p8, 1, 0 }
  0x12   : > { %p1380_p9 = pneg %p1766_p8  ;;  %s193_s7 = sshll.u32 %s1688_s6, 4  ;;  %s194_s7 = int_to_ptr.vmem [resolvable:$true] %s193_s7 }
  0x13   : > { %s1548_s8 = scalar_lea.vmem %s177_s29, 8192  ;;  %p1556_p3 = scmp.lt.s32.totalorder %s177_s29, %s177_s29 }
  0x14   : > { %p1774_p10 = pnand %p1380_p9, %p2198_p1  ;;  %p1549_p12 = scmp.ne.s32.totalorder %s177_s29, %s1548_s8 }
  0x15   : > { %p1557_p5 = scmp.lt.s32.totalorder %s1548_s8, %s1548_s8 }
  0x16   : > { %p1539_p11 = pneg %p1774_p10 }
  0x17   : > { %p1558_p7 = por %p1557_p5, %p1556_p3 }
  0x18   : > { %p1551_p13 = pnand %p1549_p12, %p1539_p11 }
  0x1a   : > { %p1552_p0 = pneg %p1551_p13 }
  0x1c   : > { %p1559_p9 = pnand %p1558_p7, %p1552_p0 }
  0x1e   : > { %1562 = shalt.err (!%p1559_p9)
}
  0x1f   : > { %s1689_s9 = smov 256   ;;  %s1690_s10 = smov 16  }
  0x20   : > { %1383 = dma.hbm_to_vmem [thread:$0]  (!%p1774_p10), %s2193_s1, 8192, %s177_s29, [#allocation7], %s1689_s9, %s1689_s9, %s1690_s10  }
  0x21   : > { %s1574_s13 = scalar_lea.vmem %s194_s7, 64  ;;  %p1582_p0 = scmp.lt.s32.totalorder %s194_s7, %s194_s7 }
  0x22   : > { %p1575_p12 = scmp.ne.s32.totalorder %s194_s7, %s1574_s13  ;;  %p1583_p5 = scmp.lt.s32.totalorder %s1574_s13, %s1574_s13 }
  0x24   : > { %p1577_p13 = pnand %p1575_p12, %p1539_p11  ;;  %p1584_p7 = por %p1583_p5, %p1582_p0 }
  0x26   : > { %p1578_p3 = pneg %p1577_p13 }
  0x28   : > { %p1585_p9 = pnand %p1584_p7, %p1578_p3 }
  0x2a   : > { %1588 = shalt.err (!%p1585_p9)
}
  0x2b   : > { %1386 = dma.hbm_to_vmem [thread:$0]  (!%p1774_p10), %s2195_s3, 64, %s194_s7, [#allocation7]  }
  0x2c   : > { %s1800_s16 = sadd.s32 1, %s1685_s23   ;;  %s30_s17 = sadd.s32 1, %s1681_s22 }
  0x2d   : > { %s27_s18 = ssub.s32 %s1685_s23, %s1800_s16  ;;  %p37_p11 = scmp.ne.s32.totalorder %s1681_s22, %s1677_s21 }
  0x2e   : > { %p28_p12 = scmp.eq.s32.totalorder %s27_s18, 0  ;;  %p38_p13 = scmp.eq.s32.totalorder %s1685_s23, 0 }
  0x2f   : > { %p1810_p3 = por %p151_p2, %p37_p11  ;;  %p1397_p0 = scmp.lt.s32.totalorder %s1685_s23, 3 }
  0x30   : > { %s1816_s24 = scalar_select %p28_p12, %s1681_s22, %s30_s17  }
  0x31   : > { %s2214_s19 = scalar_select %p1810_p3, 1, 0 }
  0x32   : > { %p39_p5 = por %p38_p13, %p37_p11  ;;  %s207_s28 = sand.u32 1, %s1681_s22  }
  0x33   : > { %s1290_s29 = sshll.u32 %s207_s28, 8  ;;  %s1367_s30 = sshll.u32 %s1685_s23, 12 }
  0x34   : > { %s1823_s8 = scalar_lea.hbm %s2192_s0, %s1367_s30  ;;  %s211_s11 = scalar_lea.vmem [#allocation3], %s1290_s29 }
  0x35   : > { %s219_s12 = sshll.u32 %s211_s11, 4  ;;  %p1827_p2 = pnand %p1397_p0, %p39_p5  ;;  %s1825_s12 = int_to_ptr.vmem [resolvable:$true] %s219_s12 }
  0x36   : > { %s1831_s14 = scalar_lea.sflag [#allocation4], %s207_s28  ;;  %s1589_s15 = scalar_lea.hbm %s1823_s8, 4096 }
  0x37   : > { %p1590_p10 = scmp.ne.s32.totalorder %s1823_s8, %s1589_s15  ;;  %p1591_p7 = pneg %p1827_p2 }
  0x38   : > { %s1594_s29 = scalar_lea.hbm %s2192_s0, 12288  ;;  %p1595_p12 = scmp.lt.s32.totalorder %s1823_s8, %s2192_s0 }
  0x39   : > { %p1592_p9 = pnand %p1591_p7, %p1590_p10  ;;  %p1596_p13 = scmp.lt.s32.totalorder %s1594_s29, %s1589_s15 }
  0x3b   : > { %p1593_p11 = pneg %p1592_p9  ;;  %p1597_p0 = por %p1596_p13, %p1595_p12 }
  0x3d   : > { %p1598_p5 = pnand %p1597_p0, %p1593_p11 }
  0x3f   : > { %1601 = shalt.err (!%p1598_p5)
}
  0x40   : > { %s1602_s28 = scalar_lea.vmem %s1825_s12, 4096  ;;  %s1691_s7 = smov [#allocation3]  }
  0x41   : > { %p1603_p1 = scmp.ne.s32.totalorder %s1825_s12, %s1602_s28  ;;  %s1607_s11 = sshll.u32 %s1691_s7, 4  ;;  %s1608_s11 = int_to_ptr.vmem [resolvable:$false] %s1607_s11 }
  0x42   : > { %s1609_s17 = scalar_lea.vmem %s1608_s11, 8192  ;;  %p1610_p9 = scmp.lt.s32.totalorder %s1825_s12, %s1608_s11 }
  0x43   : > { %p1605_p6 = pnand %p1603_p1, %p1591_p7  ;;  %p1611_p3 = scmp.lt.s32.totalorder %s1609_s17, %s1602_s28 }
  0x45   : > { %p1606_p10 = pneg %p1605_p6  ;;  %p1612_p4 = por %p1611_p3, %p1610_p9 }
  0x47   : > { %p1613_p8 = pnand %p1612_p4, %p1606_p10 }
  0x49   : > { %1616 = shalt.err (!%p1613_p8)
}
  0x4a   : > { %1390 = dma.hbm_to_vmem [thread:$0]  (!%p1827_p2), %s1823_s8, 4096, %s1825_s12, %s1831_s14, %s1689_s9, %s1689_s9, %s1690_s10  }
  0x4b   : > { %p2216_p1 = scmp.ne.s32.totalorder %s2212_s27, 0 }
  0x4d   : > { %231 = sbr.rel (%p2216_p1) target bundleno = 719 (0x2cf), region = 40 }
  0x52   : > { %s1858_s15 = sand.u32 1, %s1677_s21   ;;  %p2217_p4 = scmp.ne.s32.totalorder %s2210_s25, 0 }
  0x53   : > { %s1295_s18 = sshll.u32 %s1858_s15, 8  ;;  %s234_s29 = scalar_lea.sflag [#allocation4], %s1858_s15 }
  0x54   : > { %s1862_s30 = scalar_lea.vmem [#allocation3], %s1295_s18 }
  0x55   : > { %1660 = dma.done.wait (%p2217_p4), %s234_s29, 4096  }
  0x56   : > { %1662 = vsyncadd (%p2217_p4), %s234_s29, 4294963200  ;;  %p2218_p6 = scmp.eq.s32.totalorder %s1747_s4, 0 }
  0x58   : > { %1664 = dma.done.wait (%p2218_p6), [#allocation7], 8256   ;;  %p2219_p8 = pmov %p2218_p6 }
  0x59   : > { %v1437_v0 = vld [vmem:[#allocation6 + $0xe4] ss:$16 sps:$4 sm:$0xff]   ;;  %v1439_v1 = vld [vmem:[#allocation6 + $0xec] ss:$16 sps:$4 sm:$0xff]   ;;  %v1441_v2 = vld [vmem:[#allocation6 + $0xe0] ss:$16 sps:$4 sm:$0xff]  }
  0x5a   : > { %1666 = vsyncadd (%p2219_p8), [#allocation7], 4294959040  ;;  %726 = vmatprep.subr.bf16.mxu0 %v1437_v0  ;;  %v1442_v3 = vld [vmem:[#allocation6 + $0xe8] ss:$16 sps:$4 sm:$0xff]   ;;  %839 = vmatprep.subr.bf16.mxu1 %v1439_v1  ;;  %v1443_v4 = vld [vmem:[#allocation6 + $0xc4] ss:$16 sps:$4 sm:$0xff]  }
  0x5b   : > { %727 = vmatpush1.bf16.msra.mxu0 %v1441_v2  ;;  %840 = vmatpush1.bf16.msra.mxu1 %v1442_v3  ;;  %v1445_v5 = vld [vmem:[#allocation6 + $0xcc] ss:$16 sps:$4 sm:$0xff]   ;;  %v1447_v6 = vld [vmem:[#allocation6 + $0xc0] ss:$16 sps:$4 sm:$0xff]   ;;  %v1448_v7 = vld [vmem:[#allocation6 + $0xc8] ss:$16 sps:$4 sm:$0xff]  }
  0x5c   : > { %728 = vmatprep.subr.bf16.mxu0 %v1443_v4  ;;  %841 = vmatprep.subr.bf16.mxu1 %v1445_v5  ;;  %v1449_v8 = vld [vmem:[#allocation6 + $0xa4] ss:$16 sps:$4 sm:$0xff]   ;;  %v1451_v9 = vld [vmem:[#allocation6 + $0xac] ss:$16 sps:$4 sm:$0xff]   ;;  %v1453_v10 = vld [vmem:[#allocation6 + $0xa0] ss:$16 sps:$4 sm:$0xff]  }
  0x5d   : > { %v1454_v11 = vld [vmem:[#allocation6 + $0xa8] ss:$16 sps:$4 sm:$0xff]   ;;  %v1455_v12 = vld [vmem:[#allocation6 + $0x84] ss:$16 sps:$4 sm:$0xff]   ;;  %v1457_v13 = vld [vmem:[#allocation6 + $0x8c] ss:$16 sps:$4 sm:$0xff]  }
  0x5e   : > { %v1459_v14 = vld [vmem:[#allocation6 + $0x80] ss:$16 sps:$4 sm:$0xff]   ;;  %v1460_v15 = vld [vmem:[#allocation6 + $0x88] ss:$16 sps:$4 sm:$0xff]   ;;  %v1461_v16 = vld [vmem:[#allocation6 + $0x64] ss:$16 sps:$4 sm:$0xff]  }
  0x5f   : > { %729 = vmatpush1.bf16.msra.mxu0 %v1447_v6  ;;  %842 = vmatpush1.bf16.msra.mxu1 %v1448_v7  ;;  %v1463_v17 = vld [vmem:[#allocation6 + $0x6c] ss:$16 sps:$4 sm:$0xff]   ;;  %v1465_v18 = vld [vmem:[#allocation6 + $0x60] ss:$16 sps:$4 sm:$0xff]   ;;  %v1466_v19 = vld [vmem:[#allocation6 + $0x68] ss:$16 sps:$4 sm:$0xff]  }
  0x60   : > { %730 = vmatprep.subr.bf16.mxu0 %v1449_v8  ;;  %843 = vmatprep.subr.bf16.mxu1 %v1451_v9  ;;  %v1467_v20 = vld [vmem:[#allocation6 + $0x44] ss:$16 sps:$4 sm:$0xff]   ;;  %v1469_v21 = vld [vmem:[#allocation6 + $0x4c] ss:$16 sps:$4 sm:$0xff]   ;;  %v1471_v22 = vld [vmem:[#allocation6 + $0x40] ss:$16 sps:$4 sm:$0xff]  }
  0x61   : > { %v1472_v23 = vld [vmem:[#allocation6 + $0x48] ss:$16 sps:$4 sm:$0xff]   ;;  %v1473_v24 = vld [vmem:[#allocation6 + $0x24] ss:$16 sps:$4 sm:$0xff]   ;;  %v1475_v25 = vld [vmem:[#allocation6 + $0x2c] ss:$16 sps:$4 sm:$0xff]  }
  0x62   : > { %v1477_v26 = vld [vmem:[#allocation6 + $0x20] ss:$16 sps:$4 sm:$0xff]   ;;  %v1478_v27 = vld [vmem:[#allocation6 + $0x28] ss:$16 sps:$4 sm:$0xff]   ;;  %v1479_v28 = vld [vmem:[#allocation6 + $0x4] ss:$16 sps:$4 sm:$0xff]  }
  0x63   : > { %731 = vmatpush1.bf16.msra.mxu0 %v1453_v10  ;;  %844 = vmatpush1.bf16.msra.mxu1 %v1454_v11  ;;  %v1481_v29 = vld [vmem:[#allocation6 + $0xc] ss:$16 sps:$4 sm:$0xff]   ;;  %v1483_v30 = vld [vmem:[#allocation6] ss:$16 sps:$4 sm:$0xff]   ;;  %v1484_v31 = vld [vmem:[#allocation6 + $0x8] ss:$16 sps:$4 sm:$0xff]  }
  0x64   : > { %732 = vmatprep.subr.bf16.mxu0 %v1455_v12  ;;  %845 = vmatprep.subr.bf16.mxu1 %v1457_v13  ;;  %v1485_v32 = vld [vmem:[#allocation6 + $0x1e4] ss:$16 sps:$4 sm:$0xff]   ;;  %v1487_v33 = vld [vmem:[#allocation6 + $0x1ec] ss:$16 sps:$4 sm:$0xff]   ;;  %v1489_v34 = vld [vmem:[#allocation6 + $0x1e0] ss:$16 sps:$4 sm:$0xff]  }
  0x65   : > { %v1490_v35 = vld [vmem:[#allocation6 + $0x1e8] ss:$16 sps:$4 sm:$0xff]   ;;  %v1491_v36 = vld [vmem:[#allocation6 + $0x1c4] ss:$16 sps:$4 sm:$0xff]   ;;  %v1493_v37 = vld [vmem:[#allocation6 + $0x1cc] ss:$16 sps:$4 sm:$0xff]  }
  0x66   : > { %v1495_v38 = vld [vmem:[#allocation6 + $0x1c0] ss:$16 sps:$4 sm:$0xff]   ;;  %v1496_v39 = vld [vmem:[#allocation6 + $0x1c8] ss:$16 sps:$4 sm:$0xff]   ;;  %v1497_v40 = vld [vmem:[#allocation6 + $0x1a4] ss:$16 sps:$4 sm:$0xff]  }
  0x67   : > { %733 = vmatpush1.bf16.msra.mxu0 %v1459_v14  ;;  %846 = vmatpush1.bf16.msra.mxu1 %v1460_v15  ;;  %v1499_v41 = vld [vmem:[#allocation6 + $0x1ac] ss:$16 sps:$4 sm:$0xff]   ;;  %v1501_v42 = vld [vmem:[#allocation6 + $0x1a0] ss:$16 sps:$4 sm:$0xff]   ;;  %v1502_v43 = vld [vmem:[#allocation6 + $0x1a8] ss:$16 sps:$4 sm:$0xff]  }
  0x68   : > { %734 = vmatprep.subr.bf16.mxu0 %v1461_v16  ;;  %847 = vmatprep.subr.bf16.mxu1 %v1463_v17  ;;  %v1503_v44 = vld [vmem:[#allocation6 + $0x184] ss:$16 sps:$4 sm:$0xff]   ;;  %v1505_v45 = vld [vmem:[#allocation6 + $0x18c] ss:$16 sps:$4 sm:$0xff]   ;;  %v1507_v48 = vld [vmem:[#allocation6 + $0x180] ss:$16 sps:$4 sm:$0xff]  }
  0x69   : > { %v273_v46 = vld [vmem:[%s1862_s30 + $0x8] sm:$0xff]  ;;  %v275_v47 = vld [vmem:[%s1862_s30 + $0x18] sm:$0xff]  ;;  %v1509_v51 = vld [vmem:[#allocation6 + $0x164] ss:$16 sps:$4 sm:$0xff]   ;;  %s1017_s9 = sld [smem:[#allocation2]]  ;;  %s1363_s10 = sshll.u32 %s1747_s4, 4 }
  0x6a   : > { %v1508_v49 = vld [vmem:[#allocation6 + $0x188] ss:$16 sps:$4 sm:$0xff]   ;;  %v305_v50 = vpack.c.bf16 %v275_v47, %v273_v46  ;;  %v1511_v52 = vld [vmem:[#allocation6 + $0x16c] ss:$16 sps:$4 sm:$0xff]   ;;  %v1513_v53 = vld [vmem:[#allocation6 + $0x160] ss:$16 sps:$4 sm:$0xff]   ;;  %s2156_s6 = scalar_lea.hbm %s2197_s5, %s1363_s10 }
  0x6b   : > { %735 = vmatpush1.bf16.msra.mxu0 %v1465_v18  ;;  %848 = vmatpush1.bf16.msra.mxu1 %v1466_v19  ;;  %v1514_v54 = vld [vmem:[#allocation6 + $0x168] ss:$16 sps:$4 sm:$0xff]   ;;  %v1515_v55 = vld [vmem:[#allocation6 + $0x144] ss:$16 sps:$4 sm:$0xff]   ;;  %v1517_v56 = vld [vmem:[#allocation6 + $0x14c] ss:$16 sps:$4 sm:$0xff]  }
  0x6c   : > { %736 = vmatprep.subr.bf16.mxu0 %v1467_v20  ;;  %849 = vmatprep.subr.bf16.mxu1 %v1469_v21  ;;  %v1519_v57 = vld [vmem:[#allocation6 + $0x140] ss:$16 sps:$4 sm:$0xff]   ;;  %v1520_v58 = vld [vmem:[#allocation6 + $0x148] ss:$16 sps:$4 sm:$0xff]   ;;  %v1521_v59 = vld [vmem:[#allocation6 + $0x124] ss:$16 sps:$4 sm:$0xff]  }
  0x6d   : > { %758 = vmatprep.mubr.bf16.mxu0 %v305_v50  ;;  %871 = vmatprep.mubr.bf16.mxu1 %v305_v50  ;;  %v1523_v60 = vld [vmem:[#allocation6 + $0x12c] ss:$16 sps:$4 sm:$0xff]   ;;  %v1525_v61 = vld [vmem:[#allocation6 + $0x120] ss:$16 sps:$4 sm:$0xff]   ;;  %v1526_v62 = vld [vmem:[#allocation6 + $0x128] ss:$16 sps:$4 sm:$0xff]  }
  0x6e   : > { %v1527_v63 = vld [vmem:[#allocation6 + $0x104] ss:$16 sps:$4 sm:$0xff]   ;;  %v1529_v0 = vld [vmem:[#allocation6 + $0x10c] ss:$16 sps:$4 sm:$0xff]   ;;  %v1531_v1 = vld [vmem:[#allocation6 + $0x100] ss:$16 sps:$4 sm:$0xff]  }
  0x6f   : > { %737 = vmatpush1.bf16.msra.mxu0 %v1471_v22  ;;  %850 = vmatpush1.bf16.msra.mxu1 %v1472_v23  ;;  %v1532_v2 = vld [vmem:[#allocation6 + $0x108] ss:$16 sps:$4 sm:$0xff]   ;;  %v272_v3 = vld [vmem:[%s1862_s30] sm:$0xff]  ;;  %v274_v4 = vld [vmem:[%s1862_s30 + $0x10] sm:$0xff]  ;;  %s270_s8 = scalar_lea.vmem [#allocation9], %s1858_s15  ;;  %s1188_s28 = scalar_lea.sflag [#allocation5], %s1858_s15 }
  0x70   : > { %738 = vmatprep.subr.bf16.mxu0 %v1473_v24  ;;  %851 = vmatprep.subr.bf16.mxu1 %v1475_v25  ;;  %v277_v5 = vld [vmem:[%s1862_s30 + $0x28] sm:$0xff]  ;;  %v279_v6 = vld [vmem:[%s1862_s30 + $0x38] sm:$0xff]  ;;  %v304_v7 = vpack.c.bf16 %v274_v4, %v272_v3  ;;  %v276_v9 = vld [vmem:[%s1862_s30 + $0x20] sm:$0xff]  ;;  %s1200_s12 = sshll.u32 %s270_s8, 4  ;;  %p2262_p2 = scmp.ne.s32.totalorder %s2214_s19, 0  ;;  %s1201_s12 = int_to_ptr.vmem [resolvable:$true] %s1200_s12 }
  0x71   : > { %v307_v8 = vpack.c.bf16 %v279_v6, %v277_v5  ;;  %v278_v10 = vld [vmem:[%s1862_s30 + $0x30] sm:$0xff]  ;;  %v281_v11 = vld [vmem:[%s1862_s30 + $0x48] sm:$0xff]  ;;  %v283_v12 = vld [vmem:[%s1862_s30 + $0x58] sm:$0xff]  ;;  %s1617_s7 = scalar_lea.vmem %s1201_s12, 16  ;;  %s1692_s11 = smov [#allocation9]  }
  0x72   : > { %v306_v13 = vpack.c.bf16 %v278_v10, %v276_v9  ;;  %v309_v14 = vpack.c.bf16 %v283_v12, %v281_v11  ;;  %v280_v15 = vld [vmem:[%s1862_s30 + $0x40] sm:$0xff]  ;;  %v282_v16 = vld [vmem:[%s1862_s30 + $0x50] sm:$0xff]  ;;  %v285_v17 = vld [vmem:[%s1862_s30 + $0x68] sm:$0xff]  ;;  %p1618_p3 = scmp.ne.s32.totalorder %s1201_s12, %s1617_s7  ;;  %s1621_s17 = sshll.u32 %s1692_s11, 4  ;;  %s1622_s17 = int_to_ptr.vmem [resolvable:$false] %s1621_s17 }
  0x73   : > { %739 = vmatpush1.bf16.msra.mxu0 %v1477_v26  ;;  %852 = vmatpush1.bf16.msra.mxu1 %v1478_v27  ;;  %v287_v18 = vld [vmem:[%s1862_s30 + $0x78] sm:$0xff]  ;;  %v308_v19 = vpack.c.bf16 %v282_v16, %v280_v15  ;;  %v284_v21 = vld [vmem:[%s1862_s30 + $0x60] sm:$0xff]  ;;  %v286_v22 = vld [vmem:[%s1862_s30 + $0x70] sm:$0xff]  ;;  %s1623_s4 = scalar_lea.vmem %s1622_s17, 32  ;;  %p1624_p12 = scmp.lt.s32.totalorder %s1201_s12, %s1622_s17 }
  0x74   : > { %740 = vmatprep.subr.bf16.mxu0 %v1479_v28  ;;  %853 = vmatprep.subr.bf16.mxu1 %v1481_v29  ;;  %v311_v20 = vpack.c.bf16 %v287_v18, %v285_v17  ;;  %v289_v23 = vld [vmem:[%s1862_s30 + $0x88] sm:$0xff]  ;;  %v291_v24 = vld [vmem:[%s1862_s30 + $0x98] sm:$0xff]  ;;  %v310_v25 = vpack.c.bf16 %v286_v22, %v284_v21  ;;  %v288_v27 = vld [vmem:[%s1862_s30 + $0x80] sm:$0xff]  ;;  %p1619_p7 = pnand %p1618_p3, %p2262_p2  ;;  %p1625_p13 = scmp.lt.s32.totalorder %s1623_s4, %s1617_s7 }
  0x75   : > { %v313_v26 = vpack.c.bf16 %v291_v24, %v289_v23  ;;  %v290_v28 = vld [vmem:[%s1862_s30 + $0x90] sm:$0xff]  ;;  %v293_v29 = vld [vmem:[%s1862_s30 + $0xa8] sm:$0xff] }
  0x76   : > { %v302_v46 = vld [vmem:[%s1862_s30 + $0xf0] sm:$0xff]  ;;  %p1620_p11 = pneg %p1619_p7  ;;  %p1626_p0 = por %p1625_p13, %p1624_p12 }
  0x77   : > { %741 = vmatpush1.bf16.msra.mxu0 %v1483_v30  ;;  %854 = vmatpush1.bf16.msra.mxu1 %v1484_v31  ;;  %v295_v30 = vld [vmem:[%s1862_s30 + $0xb8] sm:$0xff]  ;;  %v312_v31 = vpack.c.bf16 %v290_v28, %v288_v27 }
  0x78   : > { %742 = vmatprep.subr.bf16.mxu0 %v1485_v32  ;;  %855 = vmatprep.subr.bf16.mxu1 %v1487_v33  ;;  %v315_v32 = vpack.c.bf16 %v295_v30, %v293_v29  ;;  %v292_v33 = vld [vmem:[%s1862_s30 + $0xa0] sm:$0xff]  ;;  %p1627_p5 = pnand %p1626_p0, %p1620_p11 }
  0x7b   : > { %743 = vmatpush2.bf16.msra.mxu0 %v1489_v34  ;;  %856 = vmatpush2.bf16.msra.mxu1 %v1490_v35  ;;  %v294_v34 = vld [vmem:[%s1862_s30 + $0xb0] sm:$0xff]  ;;  %v297_v35 = vld [vmem:[%s1862_s30 + $0xc8] sm:$0xff] }
  0x7c   : > { %744 = vmatprep.subr.bf16.mxu0 %v1491_v36  ;;  %857 = vmatprep.subr.bf16.mxu1 %v1493_v37  ;;  %v299_v36 = vld [vmem:[%s1862_s30 + $0xd8] sm:$0xff]  ;;  %v314_v37 = vpack.c.bf16 %v294_v34, %v292_v33 }
  0x7f   : > { %745 = vmatpush2.bf16.msra.mxu0 %v1495_v38  ;;  %858 = vmatpush2.bf16.msra.mxu1 %v1496_v39  ;;  %v317_v38 = vpack.c.bf16 %v299_v36, %v297_v35  ;;  %v296_v39 = vld [vmem:[%s1862_s30 + $0xc0] sm:$0xff] }
  0x80   : > { %746 = vmatprep.subr.bf16.mxu0 %v1497_v40  ;;  %859 = vmatprep.subr.bf16.mxu1 %v1499_v41  ;;  %v298_v40 = vld [vmem:[%s1862_s30 + $0xd0] sm:$0xff]  ;;  %v301_v41 = vld [vmem:[%s1862_s30 + $0xe8] sm:$0xff] }
  0x83   : > { %747 = vmatpush2.bf16.msra.mxu0 %v1501_v42  ;;  %860 = vmatpush2.bf16.msra.mxu1 %v1502_v43  ;;  %v303_v42 = vld [vmem:[%s1862_s30 + $0xf8] sm:$0xff]  ;;  %v316_v43 = vpack.c.bf16 %v298_v40, %v296_v39 }
  0x84   : > { %748 = vmatprep.subr.bf16.mxu0 %v1503_v44  ;;  %861 = vmatprep.subr.bf16.mxu1 %v1505_v45  ;;  %v319_v44 = vpack.c.bf16 %v303_v42, %v301_v41  ;;  %v300_v45 = vld [vmem:[%s1862_s30 + $0xe0] sm:$0xff] }
  0x85   : > { %v318_v47 = vpack.c.bf16 %v302_v46, %v300_v45 }
  0x87   : > { %749 = vmatpush2.bf16.msra.mxu0 %v1507_v48  ;;  %862 = vmatpush2.bf16.msra.mxu1 %v1508_v49  ;;  %v386_v48 = vlaneseq }
  0x88   : > { %750 = vmatprep.subr.bf16.mxu0 %v1509_v51  ;;  %863 = vmatprep.subr.bf16.mxu1 %v1511_v52  ;;  %v1908_v52 = vld [vmem:[#allocation8] sm:$0xf] }
  0x89   : > { %v1904_v49 = vshrl.u32 %v386_v48, 7  ;;  %2221 = vst [vmem:[#allocation14_spill] sm:$0xff] %v1908_v52 }
  0x8b   : > { %751 = vmatpush2.bf16.msra.mxu0 %v1513_v53  ;;  %864 = vmatpush2.bf16.msra.mxu1 %v1514_v54  ;;  %2220 = vst [vmem:[#allocation13_spill] sm:$0xff] %v1904_v49  ;;  %v2203_v50 = vsub.s32 1, %v1904_v49  ;;  %v2202_v51 = vsub.s32 3, %v1904_v49  ;;  %v2207_v48 = vsub.s32 2, %v1904_v49 }
  0x8c   : > { %752 = vmatprep.subr.bf16.mxu0 %v1515_v55  ;;  %865 = vmatprep.subr.bf16.mxu1 %v1517_v56 }
  0x8d   : > { %v1027_v55 = vrot.slane %v1908_v52, %v2203_v50  ;;  %v1035_v56 = vrot.slane %v1908_v52, %v2202_v51  ;;  %v384_v51 = vld [vmem:[%s2194_s2] sm:$0xf] }
  0x8f   : > { %753 = vmatpush2.bf16.msra.mxu0 %v1519_v57  ;;  %866 = vmatpush2.bf16.msra.mxu1 %v1520_v58 }
  0x90   : > { %754 = vmatprep.subr.bf16.mxu0 %v1521_v59  ;;  %867 = vmatprep.subr.bf16.mxu1 %v1523_v60 }
  0x93   : > { %755 = vmatpush2.bf16.msra.mxu0 %v1525_v61  ;;  %868 = vmatpush2.bf16.msra.mxu1 %v1526_v62 }
  0x94   : > { %756 = vmatprep.subr.bf16.mxu0 %v1527_v63  ;;  %869 = vmatprep.subr.bf16.mxu1 %v1529_v0 }
  0x97   : > { %757 = vmatpush2.bf16.msra.mxu0 %v1531_v1  ;;  %870 = vmatpush2.bf16.msra.mxu1 %v1532_v2 }
  0x9a   : > { %759 = vmatmul.mubr.bf16.vlgmr.msra.gmra.mxu0 %v304_v7  ;;  %872 = vmatmul.mubr.bf16.vlgmr.msra.gmra.mxu1 %v304_v7 }
  0x9b   : > { %768 = vmatprep.mubr.bf16.mxu0 %v307_v8  ;;  %881 = vmatprep.mubr.bf16.mxu1 %v307_v8 }
  0xa2   : > { %769 = vmatmul.mubr.bf16.gmra.mxu0 %v306_v13  ;;  %882 = vmatmul.mubr.bf16.gmra.mxu1 %v306_v13 }
  0xa3   : > { %778 = vmatprep.mubr.bf16.mxu0 %v309_v14  ;;  %891 = vmatprep.mubr.bf16.mxu1 %v309_v14 }
  0xaa   : > { %779 = vmatmul.mubr.bf16.gmra.mxu0 %v308_v19  ;;  %892 = vmatmul.mubr.bf16.gmra.mxu1 %v308_v19 }
  0xab   : > { %788 = vmatprep.mubr.bf16.mxu0 %v311_v20  ;;  %901 = vmatprep.mubr.bf16.mxu1 %v311_v20 }
  0xb2   : > { %789 = vmatmul.mubr.bf16.gmra.mxu0 %v310_v25  ;;  %902 = vmatmul.mubr.bf16.gmra.mxu1 %v310_v25 }
  0xb3   : > { %798 = vmatprep.mubr.bf16.mxu0 %v313_v26  ;;  %911 = vmatprep.mubr.bf16.mxu1 %v313_v26 }
  0xba   : > { %799 = vmatmul.mubr.bf16.gmra.mxu0 %v312_v31  ;;  %912 = vmatmul.mubr.bf16.gmra.mxu1 %v312_v31 }
  0xbb   : > { %808 = vmatprep.mubr.bf16.mxu0 %v315_v32  ;;  %921 = vmatprep.mubr.bf16.mxu1 %v315_v32 }
  0xc2   : > { %809 = vmatmul.mubr.bf16.gmra.mxu0 %v314_v37  ;;  %922 = vmatmul.mubr.bf16.gmra.mxu1 %v314_v37 }
  0xc3   : > { %818 = vmatprep.mubr.bf16.mxu0 %v317_v38  ;;  %931 = vmatprep.mubr.bf16.mxu1 %v317_v38 }
  0xca   : > { %819 = vmatmul.mubr.bf16.gmra.mxu0 %v316_v43  ;;  %932 = vmatmul.mubr.bf16.gmra.mxu1 %v316_v43 }
  0xcb   : > { %828 = vmatprep.mubr.bf16.mxu0 %v319_v44  ;;  %941 = vmatprep.mubr.bf16.mxu1 %v319_v44 }
  0xd2   : > { %829 = vmatmul.mubr.bf16.gmra.mxu0 %v318_v47  ;;  %942 = vmatmul.mubr.bf16.gmra.mxu1 %v318_v47  ;;  %v2206_v47 = vsub.s32 0, %v1904_v49 }
  0xd3   : > { %1104 = vmatprep.mubr.f32.mxu0 %v1027_v55  ;;  %1174 = vmatprep.mubr.f32.mxu1 %v1035_v56 }
 0x15a   : > { %v1910_v53 = vpop.f32.mrf.mxu0  ;;  %v1912_v54 = vpop.f32.mrf.mxu1 }
 0x15b   : > { %2222 = vst [vmem:[#allocation15_spill] sm:$0xff] %v1910_v53  ;;  %2223 = vst [vmem:[#allocation16_spill] sm:$0xff] %v1912_v54  ;;  %v2019_v54 = vrot.slane %v384_v51, %v2206_v47  ;;  %v2023_v53 = vrot.slane %v384_v51, %v2207_v48 }
 0x15c   : > { %v1920_v57 = vpop.f32.mrf.mxu0  ;;  %v1922_v58 = vpop.f32.mrf.mxu1 }
 0x15d   : > { %2224 = vst [vmem:[#allocation17_spill] sm:$0xff] %v1920_v57  ;;  %2225 = vst [vmem:[#allocation18_spill] sm:$0xff] %v1922_v58 }
 0x15e   : > { %v1924_v59 = vpop.f32.mrf.mxu0  ;;  %v1926_v60 = vpop.f32.mrf.mxu1 }
 0x15f   : > { %2226 = vst [vmem:[#allocation19_spill] sm:$0xff] %v1924_v59  ;;  %2227 = vst [vmem:[#allocation20_spill] sm:$0xff] %v1926_v60  ;;  %v2239_v60 = vsub.s32 1, %v1904_v49 }
 0x160   : > { %v1928_v61 = vpop.f32.mrf.mxu0  ;;  %v1930_v62 = vpop.f32.mrf.mxu1 }
 0x161   : > { %2228 = vst [vmem:[#allocation21_spill] sm:$0xff] %v1928_v61  ;;  %2229 = vst [vmem:[#allocation22_spill] sm:$0xff] %v1930_v62  ;;  %v2027_v59 = vrot.slane %v384_v51, %v2239_v60  ;;  %v2240_v62 = vsub.s32 3, %v1904_v49 }
 0x162   : > { %v1932_v63 = vpop.f32.mrf.mxu0  ;;  %v1934_v0 = vpop.f32.mrf.mxu1 }
 0x163   : > { %2230 = vst [vmem:[#allocation23_spill] sm:$0xff] %v1932_v63  ;;  %2231 = vst [vmem:[#allocation24_spill] sm:$0xff] %v1934_v0  ;;  %v2031_v61 = vrot.slane %v384_v51, %v2240_v62 }
 0x164   : > { %v1936_v1 = vpop.f32.mrf.mxu0  ;;  %v1938_v2 = vpop.f32.mrf.mxu1 }
 0x165   : > { %2232 = vst [vmem:[#allocation25_spill] sm:$0xff] %v1936_v1  ;;  %2233 = vst [vmem:[#allocation26_spill] sm:$0xff] %v1938_v2 }
 0x166   : > { %v1940_v3 = vpop.f32.mrf.mxu0  ;;  %v1942_v4 = vpop.f32.mrf.mxu1 }
 0x167   : > { %2234 = vst [vmem:[#allocation27_spill] sm:$0xff] %v1940_v3  ;;  %2235 = vst [vmem:[#allocation28_spill] sm:$0xff] %v1942_v4 }
 0x168   : > { %v1944_v5 = vpop.f32.mrf.mxu0  ;;  %v1946_v6 = vpop.f32.mrf.mxu1 }
 0x169   : > { %2236 = vst [vmem:[#allocation29_spill] sm:$0xff] %v1944_v5  ;;  %2237 = vst [vmem:[#allocation30_spill] sm:$0xff] %v1946_v6 }
 0x16a   : > { %v1948_v7 = vpop.f32.mrf.mxu0  ;;  %v1950_v8 = vpop.f32.mrf.mxu1 }
 0x16b   : > { %2238 = vst [vmem:[#allocation31_spill] sm:$0xff] %v1950_v8 }
 0x16c   : > { %v1952_v9 = vpop.f32.mrf.mxu0  ;;  %v1954_v10 = vpop.f32.mrf.mxu1 }
 0x16e   : > { %v1956_v11 = vpop.f32.mrf.mxu0  ;;  %v1958_v12 = vpop.f32.mrf.mxu1 }
 0x170   : > { %v1960_v13 = vpop.f32.mrf.mxu0  ;;  %v1962_v14 = vpop.f32.mrf.mxu1 }
 0x172   : > { %v1964_v15 = vpop.f32.mrf.mxu0  ;;  %v1966_v16 = vpop.f32.mrf.mxu1 }
 0x174   : > { %v1968_v17 = vpop.f32.mrf.mxu0  ;;  %v1970_v18 = vpop.f32.mrf.mxu1 }
 0x176   : > { %v1972_v19 = vpop.f32.mrf.mxu0  ;;  %v1974_v20 = vpop.f32.mrf.mxu1 }
 0x178   : > { %v1976_v21 = vpop.f32.mrf.mxu0  ;;  %v1978_v22 = vpop.f32.mrf.mxu1 }
 0x17a   : > { %v1980_v23 = vpop.f32.mrf.mxu0  ;;  %v1982_v24 = vpop.f32.mrf.mxu1 }
 0x17c   : > { %v1984_v25 = vpop.f32.mrf.mxu0  ;;  %v1986_v26 = vpop.f32.mrf.mxu1 }
 0x17e   : > { %v1988_v27 = vpop.f32.mrf.mxu0  ;;  %v1990_v28 = vpop.f32.mrf.mxu1 }
 0x180   : > { %v1992_v29 = vpop.f32.mrf.mxu0  ;;  %v1994_v30 = vpop.f32.mrf.mxu1 }
 0x182   : > { %v1996_v31 = vpop.f32.mrf.mxu0  ;;  %v1998_v32 = vpop.f32.mrf.mxu1 }
 0x184   : > { %v2000_v33 = vpop.f32.mrf.mxu0  ;;  %v2002_v34 = vpop.f32.mrf.mxu1 }
 0x186   : > { %v2004_v35 = vpop.f32.mrf.mxu0  ;;  %v2006_v36 = vpop.f32.mrf.mxu1 }
 0x188   : > { %v2008_v37 = vpop.f32.mrf.mxu0  ;;  %v2010_v38 = vpop.f32.mrf.mxu1 }
 0x18a   : > { %v820_v39 = vpop.f32.mrf.mxu0  ;;  %v933_v40 = vpop.f32.mrf.mxu1 }
 0x18c   : > { %v822_v41 = vpop.f32.mrf.mxu0  ;;  %v935_v42 = vpop.f32.mrf.mxu1 }
 0x18e   : > { %v824_v43 = vpop.f32.mrf.mxu0  ;;  %v937_v44 = vpop.f32.mrf.mxu1 }
 0x190   : > { %v826_v45 = vpop.f32.mrf.mxu0  ;;  %v939_v46 = vpop.f32.mrf.mxu1 }
 0x191   : > { %v940_v5 = vadd.f32 %v939_v46, %v2031_v61 }
 0x192   : > { %v830_v55 = vpop.f32.mrf.mxu0  ;;  %v943_v56 = vpop.f32.mrf.mxu1 }
 0x193   : > { %v831_v49 = vadd.f32 %v830_v55, %v2019_v54  ;;  %v944_v51 = vadd.f32 %v943_v56, %v2023_v53  ;;  %v1007_v46 = vmax.f32 %v940_v5, 0.0  ;;  %v815_v5 = vadd.f32 %v2004_v35, %v2019_v54 }
 0x194   : > { %v832_v50 = vpop.f32.mrf.mxu0  ;;  %v945_v52 = vpop.f32.mrf.mxu1  ;;  %v811_v35 = vadd.f32 %v1996_v31, %v2019_v54  ;;  %v805_v31 = vadd.f32 %v1988_v27, %v2019_v54  ;;  %v801_v27 = vadd.f32 %v1980_v23, %v2019_v54  ;;  %v795_v23 = vadd.f32 %v1972_v19, %v2019_v54 }
 0x195   : > { %v833_v1 = vadd.f32 %v832_v50, %v2027_v59  ;;  %v946_v48 = vadd.f32 %v945_v52, %v2031_v61  ;;  %v825_v52 = vadd.f32 %v824_v43, %v2019_v54  ;;  %v996_v56 = vmax.f32 %v815_v5, 0.0 }
 0x196   : > { %v834_v58 = vpop.f32.mrf.mxu0  ;;  %v947_v57 = vpop.f32.mrf.mxu1  ;;  %v791_v19 = vadd.f32 %v1964_v15, %v2019_v54  ;;  %v785_v15 = vadd.f32 %v1956_v11, %v2019_v54  ;;  %v781_v11 = vadd.f32 %v1948_v7, %v2019_v54 }
 0x197   : > { %v835_v0 = vadd.f32 %v834_v58, %v2019_v54  ;;  %v948_v63 = vadd.f32 %v947_v57, %v2023_v53  ;;  %v827_v57 = vadd.f32 %v826_v45, %v2027_v59  ;;  %v1009_v8 = vmax.f32 %v833_v1, 0.0 }
 0x198   : > { %v836_v47 = vpop.f32.mrf.mxu0  ;;  %v949_v2 = vpop.f32.mrf.mxu1  ;;  %v1011_v50 = vmax.f32 %v946_v48, 0.0  ;;  %v821_v1 = vadd.f32 %v820_v39, %v2019_v54  ;;  %v928_v39 = vadd.f32 %v2006_v36, %v2023_v53  ;;  %v924_v36 = vadd.f32 %v1998_v32, %v2023_v53 }
 0x199   : > { %v837_v4 = vadd.f32 %v836_v47, %v2027_v59  ;;  %v950_v3 = vadd.f32 %v949_v2, %v2031_v61  ;;  %v1012_v62 = vmax.f32 %v835_v0, 0.0  ;;  %v1014_v58 = vmax.f32 %v948_v63, 0.0 }
 0x19a   : > { %v938_v2 = vadd.f32 %v937_v44, %v2023_v53  ;;  %v823_v63 = vadd.f32 %v822_v41, %v2027_v59  ;;  %v936_v0 = vadd.f32 %v935_v42, %v2031_v61  ;;  %v1005_v45 = vmax.f32 %v827_v57, 0.0 }
 0x19b   : > { %v1013_v60 = vmax.f32 %v837_v4, 0.0  ;;  %v1015_v6 = vmax.f32 %v950_v3, 0.0  ;;  %v1008_v3 = vmax.f32 %v831_v49, 0.0  ;;  %v1010_v4 = vmax.f32 %v944_v51, 0.0 }
 0x19c   : > { %v1006_v43 = vmax.f32 %v938_v2, 0.0  ;;  %v817_v49 = vadd.f32 %v2008_v37, %v2027_v59  ;;  %v930_v41 = vadd.f32 %v2010_v38, %v2031_v61  ;;  %v1001_v44 = vmax.f32 %v823_v63, 0.0 }
 0x19d   : > { %1040 = vmatprep.subr.mxu0 %v1013_v60  ;;  %1110 = vmatprep.subr.mxu1 %v1015_v6  ;;  %v934_v6 = vadd.f32 %v933_v40, %v2023_v53  ;;  %v1003_v42 = vmax.f32 %v936_v0, 0.0  ;;  %v1000_v40 = vmax.f32 %v821_v1, 0.0  ;;  %v813_v37 = vadd.f32 %v2000_v33, %v2027_v59 }
 0x19e   : > { %1041 = vmatpush1.xpose.msra.mxu0 %v1012_v62  ;;  %1111 = vmatpush1.xpose.msra.mxu1 %v1014_v58  ;;  %v926_v38 = vadd.f32 %v2002_v34, %v2031_v61  ;;  %v997_v48 = vmax.f32 %v817_v49, 0.0  ;;  %v999_v55 = vmax.f32 %v930_v41, 0.0  ;;  %v998_v60 = vmax.f32 %v928_v39, 0.0  ;;  %v2241_v39 = vld [vmem:[#allocation31_spill] sm:$0xff] }
 0x19f   : > { %1042 = vmatprep.subr.mxu0 %v1009_v8  ;;  %1112 = vmatprep.subr.mxu1 %v1011_v50  ;;  %v1004_v8 = vmax.f32 %v825_v52, 0.0  ;;  %v1002_v47 = vmax.f32 %v934_v6, 0.0  ;;  %v807_v33 = vadd.f32 %v1992_v29, %v2027_v59  ;;  %v920_v34 = vadd.f32 %v1994_v30, %v2031_v61 }
 0x1a0   : > { %v993_v51 = vmax.f32 %v813_v37, 0.0  ;;  %v995_v62 = vmax.f32 %v926_v38, 0.0  ;;  %v918_v32 = vadd.f32 %v1990_v28, %v2023_v53  ;;  %v992_v58 = vmax.f32 %v811_v35, 0.0  ;;  %v2242_v37 = vld [vmem:[#allocation29_spill] sm:$0xff]  ;;  %v2243_v38 = vld [vmem:[#allocation30_spill] sm:$0xff]  ;;  %v2244_v35 = vld [vmem:[#allocation27_spill] sm:$0xff] }
 0x1a1   : > { %v994_v57 = vmax.f32 %v924_v36, 0.0  ;;  %v803_v29 = vadd.f32 %v1984_v25, %v2027_v59  ;;  %v916_v30 = vadd.f32 %v1986_v26, %v2031_v61  ;;  %v989_v50 = vmax.f32 %v807_v33, 0.0  ;;  %v2245_v36 = vld [vmem:[#allocation28_spill] sm:$0xff] }
 0x1a2   : > { %1043 = vmatpush1.xpose.msra.mxu0 %v1008_v3  ;;  %1113 = vmatpush1.xpose.msra.mxu1 %v1010_v4  ;;  %v991_v52 = vmax.f32 %v920_v34, 0.0  ;;  %v914_v28 = vadd.f32 %v1982_v24, %v2023_v53  ;;  %v988_v2 = vmax.f32 %v805_v31, 0.0  ;;  %v990_v3 = vmax.f32 %v918_v32, 0.0  ;;  %v2246_v34 = vld [vmem:[#allocation25_spill] sm:$0xff] }
 0x1a3   : > { %1044 = vmatprep.subr.mxu0 %v1005_v45  ;;  %1114 = vmatprep.subr.mxu1 %v1007_v46  ;;  %v797_v25 = vadd.f32 %v1976_v21, %v2027_v59  ;;  %v910_v26 = vadd.f32 %v1978_v22, %v2031_v61  ;;  %v985_v4 = vmax.f32 %v803_v29, 0.0  ;;  %v987_v63 = vmax.f32 %v916_v30, 0.0  ;;  %v2249_v30 = vld [vmem:[#allocation24_spill] sm:$0xff] }
 0x1a4   : > { %v908_v24 = vadd.f32 %v1974_v20, %v2023_v53  ;;  %v984_v0 = vmax.f32 %v801_v27, 0.0  ;;  %v986_v45 = vmax.f32 %v914_v28, 0.0  ;;  %v793_v21 = vadd.f32 %v1968_v17, %v2027_v59  ;;  %v2250_v28 = vld [vmem:[#allocation21_spill] sm:$0xff] }
 0x1a5   : > { %v906_v22 = vadd.f32 %v1970_v18, %v2031_v61  ;;  %v981_v46 = vmax.f32 %v797_v25, 0.0  ;;  %v983_v1 = vmax.f32 %v910_v26, 0.0  ;;  %v904_v20 = vadd.f32 %v1966_v16, %v2023_v53 }
 0x1a6   : > { %1045 = vmatpush1.xpose.msra.mxu0 %v1004_v8  ;;  %1115 = vmatpush1.xpose.msra.mxu1 %v1006_v43  ;;  %v980_v6 = vmax.f32 %v795_v23, 0.0  ;;  %v982_v8 = vmax.f32 %v908_v24, 0.0  ;;  %v787_v17 = vadd.f32 %v1960_v13, %v2027_v59  ;;  %v900_v18 = vadd.f32 %v1962_v14, %v2031_v61  ;;  %v2253_v24 = vld [vmem:[#allocation20_spill] sm:$0xff] }
 0x1a7   : > { %1046 = vmatprep.subr.mxu0 %v1001_v44  ;;  %1116 = vmatprep.subr.mxu1 %v1003_v42  ;;  %v977_v43 = vmax.f32 %v793_v21, 0.0  ;;  %v979_v49 = vmax.f32 %v906_v22, 0.0  ;;  %v898_v16 = vadd.f32 %v1958_v12, %v2023_v53  ;;  %v976_v41 = vmax.f32 %v791_v19, 0.0  ;;  %v2254_v22 = vld [vmem:[#allocation17_spill] sm:$0xff] }
 0x1a8   : > { %v978_v44 = vmax.f32 %v904_v20, 0.0  ;;  %v783_v13 = vadd.f32 %v1952_v9, %v2027_v59  ;;  %v896_v14 = vadd.f32 %v1954_v10, %v2031_v61  ;;  %v973_v42 = vmax.f32 %v787_v17, 0.0 }
 0x1a9   : > { %v975_v5 = vmax.f32 %v900_v18, 0.0  ;;  %v894_v12 = vadd.f32 %v2241_v39, %v2023_v53  ;;  %v777_v9 = vadd.f32 %v2242_v37, %v2027_v59  ;;  %v890_v10 = vadd.f32 %v2243_v38, %v2031_v61  ;;  %v2257_v18 = vld [vmem:[#allocation16_spill] sm:$0xff] }
 0x1aa   : > { %1047 = vmatpush1.xpose.msra.mxu0 %v1000_v40  ;;  %1117 = vmatpush1.xpose.msra.mxu1 %v1002_v47  ;;  %v972_v40 = vmax.f32 %v785_v15, 0.0  ;;  %v974_v47 = vmax.f32 %v898_v16, 0.0  ;;  %v775_v7 = vadd.f32 %v2244_v35, %v2019_v54 }
 0x1ab   : > { %1048 = vmatprep.subr.mxu0 %v997_v48  ;;  %1118 = vmatprep.subr.mxu1 %v999_v55  ;;  %v969_v48 = vmax.f32 %v783_v13, 0.0  ;;  %v971_v55 = vmax.f32 %v896_v14, 0.0  ;;  %v970_v33 = vmax.f32 %v894_v12, 0.0  ;;  %v965_v32 = vmax.f32 %v777_v9, 0.0  ;;  %v2260_v14 = vld [vmem:[#allocation14_spill] sm:$0xff] }
 0x1ae   : > { %1049 = vmatpush1.xpose.msra.mxu0 %v996_v56  ;;  %1119 = vmatpush1.xpose.msra.mxu1 %v998_v60  ;;  %v888_v56 = vadd.f32 %v2245_v36, %v2023_v53  ;;  %v968_v60 = vmax.f32 %v781_v11, 0.0 }
 0x1af   : > { %1050 = vmatprep.subr.mxu0 %v993_v51  ;;  %1120 = vmatprep.subr.mxu1 %v995_v62  ;;  %v773_v51 = vadd.f32 %v2246_v34, %v2027_v59  ;;  %v2247_v62 = vld [vmem:[#allocation26_spill] sm:$0xff] }
 0x1b0   : > { %v886_v31 = vadd.f32 %v2247_v62, %v2031_v61  ;;  %v966_v27 = vmax.f32 %v888_v56, 0.0 }
 0x1b1   : > { %v961_v26 = vmax.f32 %v773_v51, 0.0 }
 0x1b2   : > { %1051 = vmatpush1.xpose.msra.mxu0 %v992_v58  ;;  %1121 = vmatpush1.xpose.msra.mxu1 %v994_v57  ;;  %v967_v58 = vmax.f32 %v890_v10, 0.0  ;;  %v2248_v57 = vld [vmem:[#allocation23_spill] sm:$0xff] }
 0x1b3   : > { %1052 = vmatprep.subr.mxu0 %v989_v50  ;;  %1122 = vmatprep.subr.mxu1 %v991_v52  ;;  %v771_v29 = vadd.f32 %v2248_v57, %v2019_v54  ;;  %v884_v50 = vadd.f32 %v2249_v30, %v2023_v53  ;;  %v964_v52 = vmax.f32 %v775_v7, 0.0 }
 0x1b5   : > { %v962_v21 = vmax.f32 %v884_v50, 0.0 }
 0x1b6   : > { %1053 = vmatpush1.xpose.msra.mxu0 %v988_v2  ;;  %1123 = vmatpush1.xpose.msra.mxu1 %v990_v3  ;;  %v767_v2 = vadd.f32 %v2250_v28, %v2027_v59  ;;  %v2251_v3 = vld [vmem:[#allocation22_spill] sm:$0xff] }
 0x1b7   : > { %1054 = vmatprep.subr.mxu0 %v985_v4  ;;  %1124 = vmatprep.subr.mxu1 %v987_v63  ;;  %v880_v25 = vadd.f32 %v2251_v3, %v2031_v61  ;;  %v963_v4 = vmax.f32 %v886_v31, 0.0  ;;  %v2252_v63 = vld [vmem:[#allocation19_spill] sm:$0xff] }
 0x1b8   : > { %v765_v23 = vadd.f32 %v2252_v63, %v2019_v54  ;;  %v957_v20 = vmax.f32 %v767_v2, 0.0 }
 0x1ba   : > { %1055 = vmatpush1.xpose.msra.mxu0 %v984_v0  ;;  %1125 = vmatpush1.xpose.msra.mxu1 %v986_v45  ;;  %v878_v0 = vadd.f32 %v2253_v24, %v2023_v53  ;;  %v960_v45 = vmax.f32 %v771_v29, 0.0 }
 0x1bb   : > { %1056 = vmatprep.subr.mxu0 %v981_v46  ;;  %1126 = vmatprep.subr.mxu1 %v983_v1  ;;  %v763_v46 = vadd.f32 %v2254_v22, %v2027_v59  ;;  %v2255_v1 = vld [vmem:[#allocation18_spill] sm:$0xff] }
 0x1bc   : > { %v876_v19 = vadd.f32 %v2255_v1, %v2031_v61  ;;  %v958_v15 = vmax.f32 %v878_v0, 0.0 }
 0x1bd   : > { %v953_v16 = vmax.f32 %v763_v46, 0.0 }
 0x1be   : > { %1057 = vmatpush1.xpose.msra.mxu0 %v980_v6  ;;  %1127 = vmatpush1.xpose.msra.mxu1 %v982_v8  ;;  %v959_v6 = vmax.f32 %v880_v25, 0.0  ;;  %v2256_v8 = vld [vmem:[#allocation15_spill] sm:$0xff] }
 0x1bf   : > { %1058 = vmatprep.subr.mxu0 %v977_v43  ;;  %1128 = vmatprep.subr.mxu1 %v979_v49  ;;  %v761_v17 = vadd.f32 %v2256_v8, %v2019_v54  ;;  %v874_v43 = vadd.f32 %v2257_v18, %v2023_v53  ;;  %v956_v49 = vmax.f32 %v765_v23, 0.0  ;;  %v1018_v53 = vstv %s1017_s9 }
 0x1c1   : > { %v952_v59 = vmax.f32 %v761_v17, 0.0  ;;  %v954_v61 = vmax.f32 %v874_v43, 0.0 }
 0x1c2   : > { %1059 = vmatpush1.xpose.msra.mxu0 %v976_v41  ;;  %1129 = vmatpush1.xpose.msra.mxu1 %v978_v44  ;;  %v955_v41 = vmax.f32 %v876_v19, 0.0  ;;  %v2258_v44 = vld [vmem:[#allocation13_spill] sm:$0xff] }
 0x1c3   : > { %1060 = vmatprep.subr.mxu0 %v973_v42  ;;  %1130 = vmatprep.subr.mxu1 %v975_v5  ;;  %v2259_v13 = vsub.s32 0, %v2258_v44  ;;  %v2261_v5 = vsub.s32 2, %v2258_v44 }
 0x1c5   : > { %v1023_v42 = vrot.slane %v2260_v14, %v2259_v13  ;;  %v1031_v54 = vrot.slane %v2260_v14, %v2261_v5 }
 0x1c6   : > { %1061 = vmatpush1.xpose.msra.mxu0 %v972_v40  ;;  %1131 = vmatpush1.xpose.msra.mxu1 %v974_v47 }
 0x1c7   : > { %1062 = vmatprep.subr.mxu0 %v969_v48  ;;  %1132 = vmatprep.subr.mxu1 %v971_v55 }
 0x1ca   : > { %1063 = vmatpush1.xpose.msra.mxu0 %v968_v60  ;;  %1133 = vmatpush1.xpose.msra.mxu1 %v970_v33 }
 0x1cb   : > { %1064 = vmatprep.subr.mxu0 %v965_v32  ;;  %1134 = vmatprep.subr.mxu1 %v967_v58 }
 0x1ce   : > { %1065 = vmatpush1.xpose.msra.mxu0 %v964_v52  ;;  %1135 = vmatpush1.xpose.msra.mxu1 %v966_v27 }
 0x1cf   : > { %1066 = vmatprep.subr.mxu0 %v961_v26  ;;  %1136 = vmatprep.subr.mxu1 %v963_v4 }
 0x1d2   : > { %1067 = vmatpush1.xpose.msra.mxu0 %v960_v45  ;;  %1137 = vmatpush1.xpose.msra.mxu1 %v962_v21 }
 0x1d3   : > { %1068 = vmatprep.subr.mxu0 %v957_v20  ;;  %1138 = vmatprep.subr.mxu1 %v959_v6 }
 0x1d6   : > { %1069 = vmatpush1.xpose.msra.mxu0 %v956_v49  ;;  %1139 = vmatpush1.xpose.msra.mxu1 %v958_v15 }
 0x1d7   : > { %1070 = vmatprep.subr.mxu0 %v953_v16  ;;  %1140 = vmatprep.subr.mxu1 %v955_v41 }
 0x1da   : > { %1071 = vmatpush1.xpose.msra.mxu0 %v952_v59  ;;  %1141 = vmatpush1.xpose.msra.mxu1 %v954_v61 }
 0x1dd   : > { %1105 = vmatmul.mubr.f32.vlgmr.msra.gmra.mxu0 %v1023_v42  ;;  %1175 = vmatmul.mubr.f32.vlgmr.msra.gmra.mxu1 %v1031_v54 }
 0x29d   : > { %v1106_v11 = vpop.f32.mrf.mxu0  ;;  %v1176_v39 = vpop.f32.mrf.mxu1 }
 0x29e   : > { %v1107_v12 = vadd.f32 %v1106_v11, %v1018_v53 }
 0x29f   : > { %v1108_v40 = vpop.f32.mrf.mxu0  ;;  %v1178_v47 = vpop.f32.mrf.mxu1 }
 0x2a0   : > { %v1177_v37 = vadd.f32 %v1176_v39, %v1107_v12 }
 0x2a2   : > { %v1362_v9 = vmul.f32 -1.442695, %v1177_v37 }
 0x2a4   : > { %1533 = vpow2.f32 %v1362_v9 }
 0x2b1   : > { %v1534_v38 = vpop.eup %1533 }
 0x2b2   : > { %v1183_v10 = vadd.f32 1.0, %v1534_v38 }
 0x2b4   : > { %1535 = vrcp.f32 %v1183_v10 }
 0x2c1   : > { %v1536_v48 = vpop.eup %1535 }
 0x2c2   : > { %1186 = vst [vmem:[%s270_s8] sm:$0x1] %v1536_v48 }
 0x2c3   : > { %1630 = shalt.err (!%p1627_p5)
}
 0x2c4   : > { %s1631_s18 = scalar_lea.hbm %s2156_s6, 16  ;;  %s1635_s30 = scalar_lea.hbm %s2197_s5, 48 }
 0x2c5   : > { %p1632_p10 = scmp.ne.s32.totalorder %s2156_s6, %s1631_s18  ;;  %p1636_p4 = scmp.lt.s32.totalorder %s2156_s6, %s2197_s5 }
 0x2c6   : > { %p1637_p6 = scmp.lt.s32.totalorder %s1635_s30, %s1631_s18 }
 0x2c7   : > { %p1633_p9 = pnand %p1632_p10, %p2262_p2 }
 0x2c8   : > { %p1638_p8 = por %p1637_p6, %p1636_p4 }
 0x2c9   : > { %p1634_p1 = pneg %p1633_p9 }
 0x2cb   : > { %p1639_p3 = pnand %p1638_p8, %p1634_p1 }
 0x2cd   : > { %1642 = shalt.err (!%p1639_p3)
}
 0x2ce   : > { %1378 = dma.vmem_to_hbm [thread:$0]  (%p2262_p2), %s1201_s12, 16, %s2156_s6, %s1188_s28  }
 0x2cf PF: > { %p1400_p7 = scmp.ge.s32.totalorder %s1685_s23, 2  ;;  %s1212_s9 = sand.u32 1, %s1673_s20  }
 0x2d0   : > { %p2263_p11 = scmp.ne.s32.totalorder %s2211_s26, 0  ;;  %s1213_s10 = scalar_lea.sflag [#allocation5], %s1212_s9 }
 0x2d2   : > { %p1392_p12 = pnand %p1400_p7, %p2263_p11 }
 0x2d4   : > { %p1393_p13 = pneg %p1392_p12 }
 0x2d6   : > { %1668 = dma.done.wait (%p1393_p13), %s1213_s10, 16  }
 0x2d7   : > { %1670 = vsyncadd (%p1393_p13), %s1213_s10, 4294967280  ;;  %p20_p0 = scmp.ge.s32.totalorder %s1800_s16, 5   ;;  %s2264_s20 = smov %s1677_s21 }
 0x2d8   : > { %s2265_s21 = smov %s1681_s22  ;;  %s2266_s22 = smov %s1816_s24 }
 0x2d9   : > { %s2267_s23 = smov %s1800_s16  ;;  %22 = sbr.rel (!%p20_p0) target bundleno = 8 (0x8), region = 93 }
 0x2de   :  { %1217 = vsyncpa [#allocation4], 1 }
 0x2df   :  { %1219 = vsyncpa [#allocation4 + $0x1], 1 }
 0x2e0   :  { %1220 = vsyncpa [#allocation7], 1 }
 0x2e1   :  { %1221 = vsyncpa [#allocation5], 1 }
 0x2e2   :  { %1223 = vsyncpa [#allocation5 + $0x1], 1 }

</bundles_post_ra>
